<compile_context>
chip_gen: v6e
topology: v6e:2x2x1
jax: 0.10.0
libtpu: 0.0.40
codegen_flags: <defaults>
</compile_context>

<pallas_src>
import functools

import numpy as np
import jax
import jax.numpy as jnp
from jax import lax
from jax.experimental import pallas as pl
from jax.experimental.pallas import tpu as pltpu


def resid_block_kernel(x_ref, w0_ref, b0_ref, w1_ref, b1_ref, m_ref, o_ref, *,
                       taps):
    # x_ref: (C, N) with N = nb*HW (lane-dense, batch folded into lanes)
    # w*_ref: (C, 9*C) packed conv weights; b*_ref: (C, 1) biases
    # m_ref: (8, N) precomputed per-tap boundary masks (center tap needs none)
    x = x_ref[...].astype(jnp.float32)
    a = jnp.maximum(x, 0.0)

    def conv3x3(act, w_ref, b_ref):
        # im2col via XLU lane rotations (one roll-set for the whole nb-image
        # tile), then a single MXU matmul (C, 9C) @ (9C, N) -> (C, N).
        rows = []
        for shift, mi in taps:
            r = act if shift == 0 else pltpu.roll(act, shift=shift, axis=1)
            if mi is not None:
                r = r * m_ref[mi:mi + 1, :]        # (1,N) sublane broadcast
            rows.append(r)
        patches = jnp.concatenate(rows, axis=0)    # (9C, N)
        y = jnp.dot(w_ref[...], patches, preferred_element_type=jnp.float32)
        return y + b_ref[...]                      # (C,1) broadcast over lanes

    h = jnp.maximum(conv3x3(a, w0_ref, b0_ref), 0.0)
    h = conv3x3(h, w1_ref, b1_ref)
    o_ref[...] = (h + x).astype(o_ref.dtype)       # residual uses pre-ReLU x


def _pack_conv(w_hwio, b):
    # HWIO (3,3,Cin,Cout) + (Cout,) -> weight (Cout, 9*Cin) in tap-major, then
    # input-channel order (matches the im2col row order), bias as (Cout, 1).
    cin, cout = w_hwio.shape[2], w_hwio.shape[3]
    wp = jnp.transpose(w_hwio, (3, 0, 1, 2)).reshape(cout, 9 * cin)
    return wp.astype(jnp.float32), b.reshape(cout, 1).astype(jnp.float32)


def _choose_nb(B, C, HW, budget_bytes):
    # Rough per-image VMEM footprint: double-buffered in/out blocks
    # (2*2*C*HW*4) + live intermediates (9C*HW*4 patches + ~3 activation
    # copies) + mask rows.  Kept conservative so a tile tuned on v6e
    # (128 MiB) neither spills on v7x (64 MiB) nor blows v5e's scoped default.
    per_image = HW * 4 * (16 * C + 16)
    nb_cap = max(1, budget_bytes // per_image)
    nb_cap = min(int(nb_cap), max(1, B // 2))  # >=2 grid steps for v7x's 2 TCs
    nb = 1
    for d in range(1, nb_cap + 1):
        if B % d == 0:
            nb = d
    if (nb * HW) % 128 != 0:
        # Lane-dim block must be a multiple of 128 unless it spans the whole
        # array; fall back to a single full-array block for odd spatial sizes.
        nb = B
    return nb


def resid_block(x_nchw, w0, b0, w1, b1):
    """ResidBlock forward. NCHW in / NCHW out; conv weights in HWIO layout."""
    B, C, H, W = x_nchw.shape
    HW = H * W
    nb = _choose_nb(B, C, HW, budget_bytes=16 << 20)
    N = nb * HW

    # Batch folded into lanes: (B,C,H,W) -> (C, B*HW).  One XLA transpose.
    x_cb = x_nchw.reshape(B, C, HW).transpose(1, 0, 2).reshape(C, B * HW)
    w0p, b0p = _pack_conv(w0, b0)
    w1p, b1p = _pack_conv(w1, b1)

    # Static tap table + host-side boundary masks (tiled once per image in the
    # block).  The masks zero every lane whose 3x3 neighbour lies outside its
    # own image, which is exactly the set of lanes where the roll wraps across
    # image (or block) boundaries.
    hh = np.arange(HW) // W
    ww = np.arange(HW) % W
    taps = []
    mask_rows = []
    for kh in range(3):
        for kw in range(3):
            dh, dw = kh - 1, kw - 1
            if dh == 0 and dw == 0:
                taps.append((0, None))             # center tap: identity
                continue
            shift = (-(dh * W + dw)) % N
            valid = ((hh + dh >= 0) & (hh + dh < H) &
                     (ww + dw >= 0) & (ww + dw < W))
            taps.append((shift, len(mask_rows)))
            mask_rows.append(np.tile(valid.astype(np.float32), nb))
    masks = jnp.asarray(np.stack(mask_rows, axis=0))   # (8, N)

    cost = pl.CostEstimate(
        flops=2 * (2 * 9 * C * C * HW * B),            # two 3x3 convs
        transcendentals=0,
        bytes_accessed=2 * B * C * HW * 4 + 2 * (9 * C * C + C) * 4 + 8 * N * 4,
    )

    y = pl.pallas_call(
        functools.partial(resid_block_kernel, taps=tuple(taps)),
        out_shape=jax.ShapeDtypeStruct((C, B * HW), x_nchw.dtype),
        grid_spec=pltpu.PrefetchScalarGridSpec(
            num_scalar_prefetch=0,
            grid=(B // nb,),
            in_specs=[
                pl.BlockSpec((C, N), lambda i: (0, i)),
                pl.BlockSpec((C, 9 * C), lambda i: (0, 0)),
                pl.BlockSpec((C, 1), lambda i: (0, 0)),
                pl.BlockSpec((C, 9 * C), lambda i: (0, 0)),
                pl.BlockSpec((C, 1), lambda i: (0, 0)),
                pl.BlockSpec((8, N), lambda i: (0, 0)),
            ],
            out_specs=pl.BlockSpec((C, N), lambda i: (0, i)),
        ),
        compiler_params=pltpu.CompilerParams(
            dimension_semantics=("parallel",),
            vmem_limit_bytes=32 << 20,
        ),
        cost_estimate=cost,
    )(x_cb, w0p, b0p, w1p, b1p, masks)

    return y.reshape(C, B, HW).transpose(1, 0, 2).reshape(B, C, H, W)


def ref_forward(x_nchw, w0, b0, w1, b1):
    # Pure-JAX reference identical to the PyTorch forward (NCHW in/out).
    x = jnp.transpose(x_nchw, (0, 2, 3, 1))
    dn = ('NHWC', 'HWIO', 'NHWC')
    a = jnp.maximum(x, 0.0)
    h = lax.conv_general_dilated(a, w0, (1, 1), 'SAME', dimension_numbers=dn) + b0
    h = jnp.maximum(h, 0.0)
    h = lax.conv_general_dilated(h, w1, (1, 1), 'SAME', dimension_numbers=dn) + b1
    y = h + x
    return jnp.transpose(y, (0, 3, 1, 2))


if __name__ == "__main__":
    def make_params(key, c):
        k0, kb0, k1, kb1 = jax.random.split(key, 4)
        fan_in = c * 3 * 3
        bound = 1.0 / (fan_in ** 0.5)
        w0 = jax.random.uniform(k0, (3, 3, c, c), jnp.float32, -bound, bound)
        b0 = jax.random.uniform(kb0, (c,), jnp.float32, -bound, bound)
        w1 = jax.random.uniform(k1, (3, 3, c, c), jnp.float32, -bound, bound)
        b1 = jax.random.uniform(kb1, (c,), jnp.float32, -bound, bound)
        return w0, b0, w1, b1

    key = jax.random.PRNGKey(0)
    kx1, kp1, kx2, kp2, kx3, kp3 = jax.random.split(key, 6)

    # Primary small test shape.
    B, C, H, W = 2, 4, 16, 16
    x = jax.random.normal(kx1, (B, C, H, W), jnp.float32)
    w0, b0, w1, b1 = make_params(kp1, C)
    y = jax.block_until_ready(resid_block(x, w0, b0, w1, b1))
    y_ref = ref_forward(x, w0, b0, w1, b1)
    assert y.shape == (B, C, H, W) and y.dtype == jnp.float32
    assert jnp.allclose(y, y_ref, atol=1e-4, rtol=1e-4), \
        float(jnp.max(jnp.abs(y - y_ref)))

    # An IMPALA-like deeper stage (more channels, larger spatial plane).
    B2, C2, H2, W2 = 2, 8, 32, 32
    x2 = jax.random.normal(kx2, (B2, C2, H2, W2), jnp.float32)
    p2 = make_params(kp2, C2)
    y2 = jax.block_until_ready(resid_block(x2, *p2))
    y2_ref = ref_forward(x2, *p2)
    assert jnp.allclose(y2, y2_ref, atol=1e-4, rtol=1e-4), \
        float(jnp.max(jnp.abs(y2 - y2_ref)))

    # nb > 1 path: multiple images share one lane-axis block, so the rolls
    # wrap across image boundaries and must be fully killed by the masks.
    B3, C3, H3, W3 = 4, 4, 16, 16
    x3 = jax.random.normal(kx3, (B3, C3, H3, W3), jnp.float32)
    p3 = make_params(kp3, C3)
    y3 = jax.block_until_ready(resid_block(x3, *p3))
    y3_ref = ref_forward(x3, *p3)
    assert jnp.allclose(y3, y3_ref, atol=1e-4, rtol=1e-4), \
        float(jnp.max(jnp.abs(y3 - y3_ref)))

    print("KERNEL_OK")
</pallas_src>

<mosaic_0001>
module attributes {stable_mosaic.version = 11 : i64} {
  func.func @resid_block_kernel(%arg0: i32, %arg1: memref<4x256xf32, #tpu.memory_space<vmem>>, %arg2: memref<4x36xf32, #tpu.memory_space<vmem>>, %arg3: memref<4x1xf32, #tpu.memory_space<vmem>>, %arg4: memref<4x36xf32, #tpu.memory_space<vmem>>, %arg5: memref<4x1xf32, #tpu.memory_space<vmem>>, %arg6: memref<8x256xf32, #tpu.memory_space<vmem>>, %arg7: memref<4x256xf32, #tpu.memory_space<vmem>>) attributes {dimension_semantics = [#tpu.dimension_semantics<parallel>], iteration_bounds = array<i64: 2>, scalar_prefetch = 0 : i64, scratch_operands = 0 : i64, tpu.core_type = #tpu.core_type<tc>, window_params = [{transform_indices = @transform_0, window_bounds = array<i64: 4, 256>}, {pipeline_mode = #tpu.pipeline_mode<synchronous>, transform_indices = @transform_1, window_bounds = array<i64: 4, 36>}, {pipeline_mode = #tpu.pipeline_mode<synchronous>, transform_indices = @transform_2, window_bounds = array<i64: 4, 1>}, {pipeline_mode = #tpu.pipeline_mode<synchronous>, transform_indices = @transform_3, window_bounds = array<i64: 4, 36>}, {pipeline_mode = #tpu.pipeline_mode<synchronous>, transform_indices = @transform_4, window_bounds = array<i64: 4, 1>}, {pipeline_mode = #tpu.pipeline_mode<synchronous>, transform_indices = @transform_5, window_bounds = array<i64: 8, 256>}, {transform_indices = @transform_6, window_bounds = array<i64: 4, 256>}]} {
    %c0 = arith.constant 0 : index
    %c0_0 = arith.constant 0 : index
    %0 = vector.load %arg1[%c0, %c0_0] : memref<4x256xf32, #tpu.memory_space<vmem>>, vector<4x256xf32>
    %cst = arith.constant 0.000000e+00 : f32
    %1 = vector.broadcast %cst : f32 to vector<4x256xf32>
    %2 = arith.maximumf %0, %1 : vector<4x256xf32>
    %c17_i32 = arith.constant 17 : i32
    %3 = tpu.dynamic_rotate %2 by %c17_i32 dim 1 : vector<4x256xf32>, i32 -> vector<4x256xf32>
    %c0_1 = arith.constant 0 : index
    %c0_2 = arith.constant 0 : index
    %4 = vector.load %arg6[%c0_1, %c0_2] : memref<8x256xf32, #tpu.memory_space<vmem>>, vector<1x256xf32>
    %5 = vector.broadcast %4 : vector<1x256xf32> to vector<4x256xf32>
    %6 = arith.mulf %3, %5 : vector<4x256xf32>
    %c16_i32 = arith.constant 16 : i32
    %7 = tpu.dynamic_rotate %2 by %c16_i32 dim 1 : vector<4x256xf32>, i32 -> vector<4x256xf32>
    %c1 = arith.constant 1 : index
    %c0_3 = arith.constant 0 : index
    %8 = vector.load %arg6[%c1, %c0_3] : memref<8x256xf32, #tpu.memory_space<vmem>>, vector<1x256xf32>
    %9 = vector.broadcast %8 : vector<1x256xf32> to vector<4x256xf32>
    %10 = arith.mulf %7, %9 : vector<4x256xf32>
    %c15_i32 = arith.constant 15 : i32
    %11 = tpu.dynamic_rotate %2 by %c15_i32 dim 1 : vector<4x256xf32>, i32 -> vector<4x256xf32>
    %c2 = arith.constant 2 : index
    %c0_4 = arith.constant 0 : index
    %12 = vector.load %arg6[%c2, %c0_4] : memref<8x256xf32, #tpu.memory_space<vmem>>, vector<1x256xf32>
    %13 = vector.broadcast %12 : vector<1x256xf32> to vector<4x256xf32>
    %14 = arith.mulf %11, %13 : vector<4x256xf32>
    %c1_i32 = arith.constant 1 : i32
    %15 = tpu.dynamic_rotate %2 by %c1_i32 dim 1 : vector<4x256xf32>, i32 -> vector<4x256xf32>
    %c3 = arith.constant 3 : index
    %c0_5 = arith.constant 0 : index
    %16 = vector.load %arg6[%c3, %c0_5] : memref<8x256xf32, #tpu.memory_space<vmem>>, vector<1x256xf32>
    %17 = vector.broadcast %16 : vector<1x256xf32> to vector<4x256xf32>
    %18 = arith.mulf %15, %17 : vector<4x256xf32>
    %c255_i32 = arith.constant 255 : i32
    %19 = tpu.dynamic_rotate %2 by %c255_i32 dim 1 : vector<4x256xf32>, i32 -> vector<4x256xf32>
    %c4 = arith.constant 4 : index
    %c0_6 = arith.constant 0 : index
    %20 = vector.load %arg6[%c4, %c0_6] : memref<8x256xf32, #tpu.memory_space<vmem>>, vector<1x256xf32>
    %21 = vector.broadcast %20 : vector<1x256xf32> to vector<4x256xf32>
    %22 = arith.mulf %19, %21 : vector<4x256xf32>
    %c241_i32 = arith.constant 241 : i32
    %23 = tpu.dynamic_rotate %2 by %c241_i32 dim 1 : vector<4x256xf32>, i32 -> vector<4x256xf32>
    %c5 = arith.constant 5 : index
    %c0_7 = arith.constant 0 : index
    %24 = vector.load %arg6[%c5, %c0_7] : memref<8x256xf32, #tpu.memory_space<vmem>>, vector<1x256xf32>
    %25 = vector.broadcast %24 : vector<1x256xf32> to vector<4x256xf32>
    %26 = arith.mulf %23, %25 : vector<4x256xf32>
    %c240_i32 = arith.constant 240 : i32
    %27 = tpu.dynamic_rotate %2 by %c240_i32 dim 1 : vector<4x256xf32>, i32 -> vector<4x256xf32>
    %c6 = arith.constant 6 : index
    %c0_8 = arith.constant 0 : index
    %28 = vector.load %arg6[%c6, %c0_8] : memref<8x256xf32, #tpu.memory_space<vmem>>, vector<1x256xf32>
    %29 = vector.broadcast %28 : vector<1x256xf32> to vector<4x256xf32>
    %30 = arith.mulf %27, %29 : vector<4x256xf32>
    %c239_i32 = arith.constant 239 : i32
    %31 = tpu.dynamic_rotate %2 by %c239_i32 dim 1 : vector<4x256xf32>, i32 -> vector<4x256xf32>
    %c7 = arith.constant 7 : index
    %c0_9 = arith.constant 0 : index
    %32 = vector.load %arg6[%c7, %c0_9] : memref<8x256xf32, #tpu.memory_space<vmem>>, vector<1x256xf32>
    %33 = vector.broadcast %32 : vector<1x256xf32> to vector<4x256xf32>
    %34 = arith.mulf %31, %33 : vector<4x256xf32>
    %35 = tpu.concatenate %6, %10, %14, %18, %2, %22, %26, %30, %34 in 0 : vector<4x256xf32>, vector<4x256xf32>, vector<4x256xf32>, vector<4x256xf32>, vector<4x256xf32>, vector<4x256xf32>, vector<4x256xf32>, vector<4x256xf32>, vector<4x256xf32> -> vector<36x256xf32>
    %c0_10 = arith.constant 0 : index
    %c0_11 = arith.constant 0 : index
    %36 = vector.load %arg2[%c0_10, %c0_11] : memref<4x36xf32, #tpu.memory_space<vmem>>, vector<4x36xf32>
    %cst_12 = arith.constant dense<0.000000e+00> : vector<4x256xf32>
    %37 = tpu.matmul %36, %35, %cst_12 {dimension_numbers = #tpu.dot_dimension_numbers<[1], [0], [0], [1], [0, 0, 1, 1], [], []>} : vector<4x36xf32>, vector<36x256xf32>, vector<4x256xf32> -> vector<4x256xf32>
    %c0_13 = arith.constant 0 : index
    %c0_14 = arith.constant 0 : index
    %38 = vector.load %arg3[%c0_13, %c0_14] : memref<4x1xf32, #tpu.memory_space<vmem>>, vector<4x1xf32>
    %39 = vector.broadcast %38 : vector<4x1xf32> to vector<4x256xf32>
    %40 = arith.addf %37, %39 : vector<4x256xf32>
    %cst_15 = arith.constant 0.000000e+00 : f32
    %41 = vector.broadcast %cst_15 : f32 to vector<4x256xf32>
    %42 = arith.maximumf %40, %41 : vector<4x256xf32>
    %c17_i32_16 = arith.constant 17 : i32
    %43 = tpu.dynamic_rotate %42 by %c17_i32_16 dim 1 : vector<4x256xf32>, i32 -> vector<4x256xf32>
    %c0_17 = arith.constant 0 : index
    %c0_18 = arith.constant 0 : index
    %44 = vector.load %arg6[%c0_17, %c0_18] : memref<8x256xf32, #tpu.memory_space<vmem>>, vector<1x256xf32>
    %45 = vector.broadcast %44 : vector<1x256xf32> to vector<4x256xf32>
    %46 = arith.mulf %43, %45 : vector<4x256xf32>
    %c16_i32_19 = arith.constant 16 : i32
    %47 = tpu.dynamic_rotate %42 by %c16_i32_19 dim 1 : vector<4x256xf32>, i32 -> vector<4x256xf32>
    %c1_20 = arith.constant 1 : index
    %c0_21 = arith.constant 0 : index
    %48 = vector.load %arg6[%c1_20, %c0_21] : memref<8x256xf32, #tpu.memory_space<vmem>>, vector<1x256xf32>
    %49 = vector.broadcast %48 : vector<1x256xf32> to vector<4x256xf32>
    %50 = arith.mulf %47, %49 : vector<4x256xf32>
    %c15_i32_22 = arith.constant 15 : i32
    %51 = tpu.dynamic_rotate %42 by %c15_i32_22 dim 1 : vector<4x256xf32>, i32 -> vector<4x256xf32>
    %c2_23 = arith.constant 2 : index
    %c0_24 = arith.constant 0 : index
    %52 = vector.load %arg6[%c2_23, %c0_24] : memref<8x256xf32, #tpu.memory_space<vmem>>, vector<1x256xf32>
    %53 = vector.broadcast %52 : vector<1x256xf32> to vector<4x256xf32>
    %54 = arith.mulf %51, %53 : vector<4x256xf32>
    %c1_i32_25 = arith.constant 1 : i32
    %55 = tpu.dynamic_rotate %42 by %c1_i32_25 dim 1 : vector<4x256xf32>, i32 -> vector<4x256xf32>
    %c3_26 = arith.constant 3 : index
    %c0_27 = arith.constant 0 : index
    %56 = vector.load %arg6[%c3_26, %c0_27] : memref<8x256xf32, #tpu.memory_space<vmem>>, vector<1x256xf32>
    %57 = vector.broadcast %56 : vector<1x256xf32> to vector<4x256xf32>
    %58 = arith.mulf %55, %57 : vector<4x256xf32>
    %c255_i32_28 = arith.constant 255 : i32
    %59 = tpu.dynamic_rotate %42 by %c255_i32_28 dim 1 : vector<4x256xf32>, i32 -> vector<4x256xf32>
    %c4_29 = arith.constant 4 : index
    %c0_30 = arith.constant 0 : index
    %60 = vector.load %arg6[%c4_29, %c0_30] : memref<8x256xf32, #tpu.memory_space<vmem>>, vector<1x256xf32>
    %61 = vector.broadcast %60 : vector<1x256xf32> to vector<4x256xf32>
    %62 = arith.mulf %59, %61 : vector<4x256xf32>
    %c241_i32_31 = arith.constant 241 : i32
    %63 = tpu.dynamic_rotate %42 by %c241_i32_31 dim 1 : vector<4x256xf32>, i32 -> vector<4x256xf32>
    %c5_32 = arith.constant 5 : index
    %c0_33 = arith.constant 0 : index
    %64 = vector.load %arg6[%c5_32, %c0_33] : memref<8x256xf32, #tpu.memory_space<vmem>>, vector<1x256xf32>
    %65 = vector.broadcast %64 : vector<1x256xf32> to vector<4x256xf32>
    %66 = arith.mulf %63, %65 : vector<4x256xf32>
    %c240_i32_34 = arith.constant 240 : i32
    %67 = tpu.dynamic_rotate %42 by %c240_i32_34 dim 1 : vector<4x256xf32>, i32 -> vector<4x256xf32>
    %c6_35 = arith.constant 6 : index
    %c0_36 = arith.constant 0 : index
    %68 = vector.load %arg6[%c6_35, %c0_36] : memref<8x256xf32, #tpu.memory_space<vmem>>, vector<1x256xf32>
    %69 = vector.broadcast %68 : vector<1x256xf32> to vector<4x256xf32>
    %70 = arith.mulf %67, %69 : vector<4x256xf32>
    %c239_i32_37 = arith.constant 239 : i32
    %71 = tpu.dynamic_rotate %42 by %c239_i32_37 dim 1 : vector<4x256xf32>, i32 -> vector<4x256xf32>
    %c7_38 = arith.constant 7 : index
    %c0_39 = arith.constant 0 : index
    %72 = vector.load %arg6[%c7_38, %c0_39] : memref<8x256xf32, #tpu.memory_space<vmem>>, vector<1x256xf32>
    %73 = vector.broadcast %72 : vector<1x256xf32> to vector<4x256xf32>
    %74 = arith.mulf %71, %73 : vector<4x256xf32>
    %75 = tpu.concatenate %46, %50, %54, %58, %42, %62, %66, %70, %74 in 0 : vector<4x256xf32>, vector<4x256xf32>, vector<4x256xf32>, vector<4x256xf32>, vector<4x256xf32>, vector<4x256xf32>, vector<4x256xf32>, vector<4x256xf32>, vector<4x256xf32> -> vector<36x256xf32>
    %c0_40 = arith.constant 0 : index
    %c0_41 = arith.constant 0 : index
    %76 = vector.load %arg4[%c0_40, %c0_41] : memref<4x36xf32, #tpu.memory_space<vmem>>, vector<4x36xf32>
    %cst_42 = arith.constant dense<0.000000e+00> : vector<4x256xf32>
    %77 = tpu.matmul %76, %75, %cst_42 {dimension_numbers = #tpu.dot_dimension_numbers<[1], [0], [0], [1], [0, 0, 1, 1], [], []>} : vector<4x36xf32>, vector<36x256xf32>, vector<4x256xf32> -> vector<4x256xf32>
    %c0_43 = arith.constant 0 : index
    %c0_44 = arith.constant 0 : index
    %78 = vector.load %arg5[%c0_43, %c0_44] : memref<4x1xf32, #tpu.memory_space<vmem>>, vector<4x1xf32>
    %79 = vector.broadcast %78 : vector<4x1xf32> to vector<4x256xf32>
    %80 = arith.addf %77, %79 : vector<4x256xf32>
    %81 = arith.addf %80, %0 : vector<4x256xf32>
    %c0_45 = arith.constant 0 : index
    %c0_46 = arith.constant 0 : index
    %82 = vector.load %arg7[%c0_45, %c0_46] : memref<4x256xf32, #tpu.memory_space<vmem>>, vector<4x256xf32>
    tpu.vector_store %arg7[%c0_45, %c0_46], %81 {strides = array<i32>} : memref<4x256xf32, #tpu.memory_space<vmem>>, vector<4x256xf32>,
    return
  }
  func.func @transform_0(%arg0: i32) -> (i32, i32) {
    %c0_i32 = arith.constant 0 : i32
    %c0_i32_0 = arith.constant 0 : i32
    return %c0_i32, %arg0 : i32, i32
  }
  func.func @transform_1(%arg0: i32) -> (i32, i32) {
    %c0_i32 = arith.constant 0 : i32
    %c0_i32_0 = arith.constant 0 : i32
    %c0_i32_1 = arith.constant 0 : i32
    return %c0_i32, %c0_i32_0 : i32, i32
  }
  func.func @transform_2(%arg0: i32) -> (i32, i32) {
    %c0_i32 = arith.constant 0 : i32
    %c0_i32_0 = arith.constant 0 : i32
    %c0_i32_1 = arith.constant 0 : i32
    return %c0_i32, %c0_i32_0 : i32, i32
  }
  func.func @transform_3(%arg0: i32) -> (i32, i32) {
    %c0_i32 = arith.constant 0 : i32
    %c0_i32_0 = arith.constant 0 : i32
    %c0_i32_1 = arith.constant 0 : i32
    return %c0_i32, %c0_i32_0 : i32, i32
  }
  func.func @transform_4(%arg0: i32) -> (i32, i32) {
    %c0_i32 = arith.constant 0 : i32
    %c0_i32_0 = arith.constant 0 : i32
    %c0_i32_1 = arith.constant 0 : i32
    return %c0_i32, %c0_i32_0 : i32, i32
  }
  func.func @transform_5(%arg0: i32) -> (i32, i32) {
    %c0_i32 = arith.constant 0 : i32
    %c0_i32_0 = arith.constant 0 : i32
    %c0_i32_1 = arith.constant 0 : i32
    return %c0_i32, %c0_i32_0 : i32, i32
  }
  func.func @transform_6(%arg0: i32) -> (i32, i32) {
    %c0_i32 = arith.constant 0 : i32
    %c0_i32_0 = arith.constant 0 : i32
    return %c0_i32, %arg0 : i32, i32
  }
}

</mosaic_0001>

<bundles_post_ra>
// kernel: tpu_custom_call.1
= control target key start
LH: loop header
LB: loop body
LE: loop exit
PB: predicated region body
PF: predicated region fallthrough
CT: control target
= control target key end

     0   :  { %s1660_s0 = inlined_call_operand.hbm [shape: f32[4,512], index: 0, kind: input, shape index: {}]   ;;  %s1661_s1 = inlined_call_operand.hbm [shape: f32[4,36], index: 1, kind: input, shape index: {}]   ;;  %s1662_s2 = inlined_call_operand.vmem [shape: f32[4,1], index: 2, kind: input, shape index: {}]   ;;  %s1663_s3 = inlined_call_operand.hbm [shape: f32[4,36], index: 3, kind: input, shape index: {}]   ;;  %s1664_s4 = inlined_call_operand.vmem [shape: f32[4,1], index: 4, kind: input, shape index: {}]   ;;  %s1665_s5 = inlined_call_operand.vmem [shape: f32[8,256], index: 5, kind: input, shape index: {}]   ;;  %s1666_s6 = inlined_call_operand.hbm [shape: f32[4,512], index: 6, kind: output, shape index: {}]  }
   0x1   :  { %1671 = sst [smem:[#allocation12_spill]] %s1661_s1 }
   0x2   :  { %11 = vsyncpa [#allocation3], 0 }
   0x3   :  { %13 = vsyncpa [#allocation3 + $0x1], 0 }
   0x4   :  { %14 = vsyncpa [#allocation6], 0 }
   0x5   :  { %15 = vsyncpa [#allocation4], 0 }
   0x6   :  { %17 = vsyncpa [#allocation4 + $0x1], 0  ;;  %s1208_s21 = smov 0   ;;  %s1210_s22 = smov 0  }
   0x7   :  { %s1212_s23 = smov 0   ;;  %s1214_s24 = smov 0  }
   0x8 LB: > { %s1229_s25 = sadd.s32 4294967295, %s1157_s24   ;;  %s897_s26 = sadd.s32 4294967294, %s1157_s24   ;;  %s1157_s24 = sphi %s1214_s24, %s1690_s24   ;;  %s1153_s23 = sphi %s1212_s23, %s1689_s23   ;;  %s1149_s22 = sphi %s1210_s22, %s1688_s22   ;;  %s1145_s21 = sphi %s1208_s21, %s1687_s21  }
   0x9   : > { %p43_p0 = scmp.ne.s32.totalorder %s1149_s22, %s1145_s21  ;;  %p1667_p1 = scmp.eq.s32.totalorder %s1229_s25, 0 }
   0xa   : > { %p178_p3 = scmp.eq.s32.totalorder %s897_s26, 1  ;;  %p898_p5 = scmp.ge.s32.totalorder %s1157_s24, 1 }
   0xb   : > { %p1238_p4 = por %p1667_p1, %p43_p0  ;;  %p185_p7 = scmp.lt.s32.totalorder %s1157_s24, 3 }
   0xc   : > { %p1243_p6 = por %p178_p3, %p43_p0  ;;  %s1159_s30 = smov [#allocation5]  }
   0xd   : > { %s1672_s27 = scalar_select %p1238_p4, 1, 0 }
   0xe   : > { %s1673_s28 = scalar_select %p1243_p6, 1, 0 }
   0xf   : > { %p1248_p8 = pnand %p898_p5, %p185_p7  ;;  %s198_s7 = sshll.u32 %s1159_s30, 4  ;;  %s199_s7 = int_to_ptr.vmem [resolvable:$true] %s198_s7 }
  0x10   : > { %s1160_s8 = smov [#allocation7]   ;;  %s1262_s11 = sadd.s32 1, %s1157_s24  }
  0x11   : > { %s1674_s29 = scalar_select %p1248_p8, 1, 0 }
  0x12   : > { %p942_p10 = pneg %p1248_p8  ;;  %s212_s9 = sshll.u32 %s1160_s8, 4  ;;  %s213_s9 = int_to_ptr.vmem [resolvable:$true] %s212_s9 }
  0x13   : > { %s27_s12 = ssub.s32 %s1157_s24, %s1262_s11  ;;  %s1020_s13 = scalar_lea.vmem %s199_s7, 64 }
  0x14   : > { %p1257_p11 = pnand %p942_p10, %p1667_p1  ;;  %p1021_p13 = scmp.ne.s32.totalorder %s199_s7, %s1020_s13 }
  0x15   : > { %p1028_p5 = scmp.lt.s32.totalorder %s199_s7, %s199_s7  ;;  %p1029_p7 = scmp.lt.s32.totalorder %s1020_s13, %s1020_s13 }
  0x16   : > { %p1011_p12 = pneg %p1257_p11 }
  0x17   : > { %p1030_p10 = por %p1029_p7, %p1028_p5 }
  0x18   : > { %p1023_p0 = pnand %p1021_p13, %p1011_p12 }
  0x1a   : > { %p1024_p3 = pneg %p1023_p0 }
  0x1c   : > { %p1031_p9 = pnand %p1030_p10, %p1024_p3 }
  0x1e   : > { %1034 = shalt.err (!%p1031_p9)
}
  0x1f   : > { %s1676_s1 = sld [smem:[#allocation12_spill]]  ;;  %s1046_s16 = scalar_lea.vmem %s213_s9, 64 }
  0x20   : > { %p1047_p1 = scmp.ne.s32.totalorder %s213_s9, %s1046_s16  ;;  %p1054_p13 = scmp.lt.s32.totalorder %s213_s9, %s213_s9 }
  0x21   : > { %p1055_p0 = scmp.lt.s32.totalorder %s1046_s16, %s1046_s16 }
  0x22   : > { %p1049_p2 = pnand %p1047_p1, %p1011_p12 }
  0x23   : > { %p1056_p4 = por %p1055_p0, %p1054_p13 }
  0x24   : > { %p1050_p6 = pneg %p1049_p2 }
  0x25   : > { %945 = dma.hbm_to_vmem [thread:$0]  (!%p1257_p11), %s1676_s1, 64, %s199_s7, [#allocation6]  }
  0x26   : > { %p1057_p8 = pnand %p1056_p4, %p1050_p6 }
  0x28   : > { %1060 = shalt.err (!%p1057_p8)
}
  0x29   : > { %948 = dma.hbm_to_vmem [thread:$0]  (!%p1257_p11), %s1663_s3, 64, %s213_s9, [#allocation6]  }
  0x2a   : > { %p28_p1 = scmp.eq.s32.totalorder %s27_s12, 0  ;;  %s30_s19 = sadd.s32 1, %s1153_s23 }
  0x2b   : > { %p37_p2 = scmp.ne.s32.totalorder %s1153_s23, %s1149_s22  ;;  %p38_p4 = scmp.eq.s32.totalorder %s1157_s24, 0 }
  0x2c   : > { %s1289_s20 = scalar_select %p28_p1, %s1153_s23, %s30_s19  }
  0x2d   : > { %p39_p6 = por %p38_p4, %p37_p2  ;;  %p1677_p8 = scmp.eq.s32.totalorder %s1229_s25, 1 }
  0x2e   : > { %p959_p12 = scmp.lt.s32.totalorder %s1157_s24, 2  ;;  %s229_s30 = sand.u32 1, %s1153_s23  }
  0x2f   : > { %p1293_p9 = por %p1677_p8, %p37_p2  ;;  %s902_s7 = sshll.u32 %s229_s30, 3 }
  0x30   : > { %s928_s8 = sshll.u32 %s1157_s24, 7  ;;  %s233_s12 = scalar_lea.vmem [#allocation2], %s902_s7 }
  0x31   : > { %s1678_s26 = scalar_select %p1293_p9, 1, 0 }
  0x32   : > { %s1303_s9 = scalar_lea.hbm %s1660_s0, %s928_s8  ;;  %s241_s14 = sshll.u32 %s233_s12, 4  ;;  %s242_s14 = int_to_ptr.vmem [resolvable:$true] %s241_s14 }
  0x33   : > { %p1305_p11 = pnand %p959_p12, %p39_p6  ;;  %s230_s16 = scalar_lea.sflag [#allocation3], %s229_s30 }
  0x34   : > { %s1061_s17 = scalar_lea.hbm %s1303_s9, 128  ;;  %s1066_s8 = scalar_lea.hbm %s1660_s0, 256 }
  0x35   : > { %p1062_p3 = scmp.ne.s32.totalorder %s1303_s9, %s1061_s17  ;;  %p1063_p5 = pneg %p1305_p11 }
  0x36   : > { %p1067_p13 = scmp.lt.s32.totalorder %s1303_s9, %s1660_s0  ;;  %p1068_p0 = scmp.lt.s32.totalorder %s1066_s8, %s1061_s17 }
  0x37   : > { %p1064_p7 = pnand %p1063_p5, %p1062_p3 }
  0x38   : > { %p1069_p1 = por %p1068_p0, %p1067_p13 }
  0x39   : > { %p1065_p10 = pneg %p1064_p7 }
  0x3b   : > { %p1070_p2 = pnand %p1069_p1, %p1065_p10 }
  0x3d   : > { %1073 = shalt.err (!%p1070_p2)
}
  0x3e   : > { %s1074_s13 = scalar_lea.vmem %s242_s14, 128  ;;  %s1161_s30 = smov [#allocation2]  }
  0x3f   : > { %p1075_p4 = scmp.ne.s32.totalorder %s242_s14, %s1074_s13  ;;  %s1079_s12 = sshll.u32 %s1161_s30, 4  ;;  %s1080_s12 = int_to_ptr.vmem [resolvable:$false] %s1079_s12 }
  0x40   : > { %s1081_s1 = scalar_lea.vmem %s1080_s12, 256  ;;  %p1082_p12 = scmp.lt.s32.totalorder %s242_s14, %s1080_s12 }
  0x41   : > { %p1077_p6 = pnand %p1075_p4, %p1063_p5  ;;  %p1083_p3 = scmp.lt.s32.totalorder %s1081_s1, %s1074_s13 }
  0x43   : > { %p1078_p8 = pneg %p1077_p6  ;;  %p1084_p7 = por %p1083_p3, %p1082_p12 }
  0x45   : > { %p1085_p9 = pnand %p1084_p7, %p1078_p8 }
  0x47   : > { %1088 = shalt.err (!%p1085_p9)
}
  0x48   : > { %952 = dma.hbm_to_vmem [thread:$0]  (!%p1305_p11), %s1303_s9, 128, %s242_s14, %s230_s16  }
  0x49   : > { %p1680_p10 = scmp.ne.s32.totalorder %s1674_s29, 0 }
  0x4a   : > { %s1326_s17 = sand.u32 (!%p1680_p10), 1, %s1149_s22   ;;  %p1681_p5 = scmp.ne.s32.totalorder (!%p1680_p10), %s1672_s27, 0 }
  0x4b   : > { %250 = sbr.rel (%p1680_p10) target bundleno = 800 (0x320), region = 44  ;;  %s906_s18 = sshll.u32 (!%p1680_p10), %s1326_s17, 3 }
  0x4c   : > { %s253_s19 = scalar_lea.sflag (!%p1680_p10), [#allocation3], %s1326_s17  ;;  %s256_s1 = scalar_lea.vmem (!%p1680_p10), [#allocation2], %s906_s18 }
  0x50   : > { %1132 = dma.done.wait (%p1681_p5), %s253_s19, 128  }
  0x51   : > { %1134 = vsyncadd (%p1681_p5), %s253_s19, 4294967168  ;;  %p1682_p9 = scmp.eq.s32.totalorder %s1229_s25, 0 }
  0x53   : > { %1136 = dma.done.wait (%p1682_p9), [#allocation6], 128   ;;  %p1683_p11 = pmov %p1682_p9 }
  0x54   : > { %v1340_v0 = vld [vmem:[%s256_s1] sm:$0xff]  ;;  %s1162_s29 = smov 111   ;;  %s1163_s9 = smov 112   ;;  %v1168_v3 = vmov 0.0   ;;  %v1169_v4 = vmov 0   ;;  %v304_v6 = vlaneseq  ;;  %vm501_vm1 = vcmask 1043456  }
  0x55   : > { %1138 = vsyncadd (%p1683_p11), [#allocation6], 4294967168  ;;  %v1343_v1 = vmax.f32 %v1340_v0, 0.0  ;;  %s1164_s27 = smov 127   ;;  %s1165_s14 = smov 113   ;;  %591 = vmatprep.mubr.f32.mxu0 %v1168_v3  ;;  %776 = vmatprep.mubr.f32.mxu1 %v1168_v3  ;;  %vm517_vm9 = vcmask 293888  }
  0x56   : > { %s1166_s15 = smov 1   ;;  %s1167_s16 = smov 16   ;;  %1007 = vset.pattern.permute.xlu0 %v1169_v4  ;;  %v511_v5 = vld [vmem:[%s1662_s2] sm:$0xf]  ;;  %v312_v7 = vshrl.u32 %v304_v6, 7  ;;  %v1384_v8 = vand.u32 127, %v304_v6 }
  0x57   : > { %455 = vrot.lane.b32.xlu1 %v1343_v1, %s1162_s29  ;;  %433 = vrot.lane.b32.xlu0 %v1343_v1, %s1163_s9  ;;  %v1351_v2 = vcombine.high %v1343_v1, %v1343_v1  ;;  %s1170_s8 = smov 15   ;;  %s1171_s10 = smov 17   ;;  %v916_v11 = vld [vmem:[%s1665_s5 + $0x7] ss:$8 sm:$0x3] }
  0x58   : > { %v1386_v9 = vsub.s32 0, %v312_v7  ;;  %v1388_v10 = vsub.s32 1, %v312_v7  ;;  %vm459_vm0 = vcmp.lt.s32.totalorder %v1384_v8, 111  ;;  %v913_v18 = vld [vmem:[%s1665_s5 + $0x4] ss:$8 sm:$0x3] }
  0x59   : > { %vm393_vm2 = vcmp.lt.s32.totalorder %v1384_v8, 127  ;;  %v915_v24 = vld [vmem:[%s1665_s5 + $0x6] ss:$8 sm:$0x3]  ;;  %vm415_vm3 = vcmp.lt.s32.totalorder %v1384_v8, 113  ;;  %vm437_vm4 = vcmp.lt.s32.totalorder %v1384_v8, 112 }
  0x5a   : > { %v1395_v14 = vrot.slane %v916_v11, %v1386_v9  ;;  %v1398_v15 = vrot.slane %v916_v11, %v1388_v10  ;;  %v1411_v23 = vrot.slane %v913_v18, %v1388_v10  ;;  %v1418_v26 = vrot.slane %v913_v18, %v1386_v9  ;;  %v914_v30 = vld [vmem:[%s1665_s5 + $0x5] ss:$8 sm:$0x3]  ;;  %v912_v45 = vld [vmem:[%s1665_s5 + $0x3] ss:$8 sm:$0x3] }
  0x5b   : > { %389 = vrot.lane.b32.xlu0 %v1343_v1, %s1164_s27  ;;  %457 = vrot.lane.b32.xlu1 %v1351_v2, %s1162_s29  ;;  %v1431_v31 = vrot.slane %v915_v24, %v1386_v9  ;;  %v1434_v32 = vrot.slane %v915_v24, %v1388_v10  ;;  %v1439_v35 = vrot.slane %v914_v30, %v1386_v9  ;;  %vm371_vm5 = vcmp.lt.s32.totalorder %v1384_v8, 1  ;;  %v910_v60 = vld [vmem:[%s1665_s5 + $0x1] ss:$8 sm:$0x3]  ;;  %s794_s7 = scalar_lea.sflag [#allocation4], %s1326_s17  ;;  %p1684_p0 = scmp.ne.s32.totalorder %s1678_s26, 0 }
  0x5c   : > { %v1442_v36 = vrot.slane %v914_v30, %v1388_v10  ;;  %v1461_v54 = vrot.slane %v912_v45, %v1386_v9  ;;  %v1464_v55 = vrot.slane %v912_v45, %v1388_v10  ;;  %v911_v61 = vld [vmem:[%s1665_s5 + $0x2] ss:$8 sm:$0x3]  ;;  %vm327_vm6 = vcmp.lt.s32.totalorder %v1384_v8, 16  ;;  %v510_v45 = vld [vmem:[#allocation5] sm:$0xf] }
  0x5d   : > { %v1484_v6 = vrot.slane %v910_v60, %v1386_v9  ;;  %v309_v11 = vld [vmem:[%s1665_s5] ss:$8 sm:$0x3]  ;;  %vm349_vm7 = vcmp.lt.s32.totalorder %v1384_v8, 15  ;;  %vm306_vm8 = vcmp.lt.s32.totalorder %v1384_v8, 17 }
  0x5f   : > { %411 = vrot.lane.b32.xlu0 %v1343_v1, %s1165_s14  ;;  %391 = vrot.lane.b32.xlu1 %v1351_v2, %s1164_s27 }
  0x63   : > { %413 = vrot.lane.b32.xlu1 %v1351_v2, %s1165_s14  ;;  %435 = vrot.lane.b32.xlu0 %v1351_v2, %s1163_s9 }
  0x67   : > { %369 = vrot.lane.b32.xlu1 %v1351_v2, %s1166_s15  ;;  %367 = vrot.lane.b32.xlu0 %v1343_v1, %s1166_s15 }
  0x6b   : > { %325 = vrot.lane.b32.xlu1 %v1351_v2, %s1167_s16  ;;  %323 = vrot.lane.b32.xlu0 %v1343_v1, %s1167_s16 }
  0x6f   : > { %347 = vrot.lane.b32.xlu1 %v1351_v2, %s1170_s8  ;;  %345 = vrot.lane.b32.xlu0 %v1343_v1, %s1170_s8 }
  0x73   : > { %302 = vrot.lane.b32.xlu1 %v1351_v2, %s1171_s10  ;;  %300 = vrot.lane.b32.xlu0 %v1343_v1, %s1171_s10 }
  0x77   : > { %514 = vperm.xlu0 %1007, %v511_v5  }
  0xc9   : > { %v456_v12 = vpop.permute.xlu1 %455  ;;  %v434_v13 = vpop.permute.xlu0 %433 }
  0xcd   : > { %v390_v16 = vpop.permute.xlu0 %389  ;;  %v458_v17 = vpop.permute.xlu1 %457 }
  0xce   : > { %v460_v19 = vsel %vm459_vm0, %v456_v12, %v458_v17  ;;  %v461_v20 = vsel %vm459_vm0, %v458_v17, %v456_v12  ;;  %v1492_v12 = vrot.slane %v910_v60, %v1388_v10 }
  0xcf   : > { %v475_v21 = vmul.f32 %v1395_v14, %v460_v19  ;;  %v476_v22 = vmul.f32 %v1398_v15, %v461_v20  ;;  %v1507_v19 = vrot.slane %v309_v11, %v1386_v9  ;;  %v1510_v20 = vrot.slane %v309_v11, %v1388_v10 }
  0xd1   : > { %v412_v25 = vpop.permute.xlu0 %411  ;;  %917 = vmatprep.subr.msk.mxu0 %vm501_vm1, %v476_v22  ;;  %v392_v27 = vpop.permute.xlu1 %391 }
  0xd2   : > { %v394_v28 = vsel %vm393_vm2, %v390_v16, %v392_v27  ;;  %v395_v29 = vsel %vm393_vm2, %v392_v27, %v390_v16  ;;  %918 = vmatpush1.msk.msra.mxu0 %vm501_vm1, %v475_v21 }
  0xd3   : > { %v410_v33 = vmul.f32 %v1411_v23, %v395_v29  ;;  %v409_v34 = vmul.f32 %v1418_v26, %v394_v28 }
  0xd5   : > { %v414_v37 = vpop.permute.xlu1 %413  ;;  %v436_v38 = vpop.permute.xlu0 %435  ;;  %v492_v46 = vrot.slane %v410_v33, 4  ;;  %v491_v53 = vrot.slane %v409_v34, 4 }
  0xd6   : > { %v416_v39 = vsel %vm415_vm3, %v412_v25, %v414_v37  ;;  %v417_v40 = vsel %vm415_vm3, %v414_v37, %v412_v25  ;;  %v438_v41 = vsel %vm437_vm4, %v434_v13, %v436_v38  ;;  %v439_v42 = vsel %vm437_vm4, %v436_v38, %v434_v13 }
  0xd7   : > { %v453_v43 = vmul.f32 %v1431_v31, %v438_v41  ;;  %v454_v44 = vmul.f32 %v1434_v32, %v439_v42  ;;  %v431_v47 = vmul.f32 %v1439_v35, %v416_v39  ;;  %v432_v48 = vmul.f32 %v1442_v36, %v417_v40 }
  0xd8   : > { %v507_v3 = vsel %vm501_vm1, %v1351_v2, %v492_v46  ;;  %v506_v7 = vsel %vm501_vm1, %v1343_v1, %v491_v53  ;;  %v1496_v2 = vrot.slane %v911_v61, %v1386_v9  ;;  %v1499_v13 = vrot.slane %v911_v61, %v1388_v10  ;;  %v697_v53 = vld [vmem:[%s1664_s4] sm:$0xf] }
  0xd9   : > { %v497_v49 = vrot.slane %v453_v43, 4  ;;  %v498_v50 = vrot.slane %v454_v44, 4  ;;  %v370_v51 = vpop.permute.xlu1 %369  ;;  %v368_v52 = vpop.permute.xlu0 %367 }
  0xda   : > { %v372_v56 = vsel %vm371_vm5, %v368_v52, %v370_v51  ;;  %v373_v57 = vsel %vm371_vm5, %v370_v51, %v368_v52 }
  0xdb   : > { %v509_v58 = vsel %vm501_vm1, %v432_v48, %v498_v50  ;;  %v508_v59 = vsel %vm501_vm1, %v431_v47, %v497_v49  ;;  %v387_v4 = vmul.f32 %v1461_v54, %v373_v57  ;;  %v388_v5 = vmul.f32 %v1464_v55, %v372_v56 }
  0xdc   : > { %551 = vmatprep.subr.mxu0 %v509_v58 }
  0xdd   : > { %v326_v62 = vpop.permute.xlu1 %325  ;;  %552 = vmatpush1.msra.mxu0 %v508_v59  ;;  %v324_v63 = vpop.permute.xlu0 %323  ;;  %v485_v21 = vrot.slane %v387_v4, 4  ;;  %v486_v22 = vrot.slane %v388_v5, 4 }
  0xde   : > { %553 = vmatprep.subr.mxu0 %v507_v3  ;;  %v328_v16 = vsel %vm327_vm6, %v324_v63, %v326_v62  ;;  %v329_v1 = vsel %vm327_vm6, %v326_v62, %v324_v63 }
  0xdf   : > { %554 = vmatpush1.msra.mxu0 %v506_v7  ;;  %v343_v27 = vmul.f32 %v1484_v6, %v329_v1  ;;  %v344_v28 = vmul.f32 %v1492_v12, %v328_v16 }
  0xe1   : > { %v348_v17 = vpop.permute.xlu1 %347  ;;  %v346_v18 = vpop.permute.xlu0 %345  ;;  %v479_v39 = vrot.slane %v343_v27, 4  ;;  %v480_v40 = vrot.slane %v344_v28, 4 }
  0xe2   : > { %v350_v24 = vsel %vm349_vm7, %v346_v18, %v348_v17  ;;  %v351_v25 = vsel %vm349_vm7, %v348_v17, %v346_v18 }
  0xe3   : > { %v365_v29 = vmul.f32 %v1496_v2, %v351_v25  ;;  %v366_v9 = vmul.f32 %v1499_v13, %v350_v24 }
  0xe5   : > { %v303_v30 = vpop.permute.xlu1 %302  ;;  %v301_v33 = vpop.permute.xlu0 %300  ;;  %v505_v10 = vsel %vm501_vm1, %v366_v9, %v486_v22  ;;  %v504_v34 = vsel %vm501_vm1, %v365_v29, %v485_v21 }
  0xe6   : > { %v307_v37 = vsel %vm306_vm8, %v301_v33, %v303_v30  ;;  %v308_v38 = vsel %vm306_vm8, %v303_v30, %v301_v33  ;;  %555 = vmatprep.subr.mxu0 %v505_v10 }
  0xe7   : > { %v321_v41 = vmul.f32 %v1507_v19, %v308_v38  ;;  %v322_v42 = vmul.f32 %v1510_v20, %v307_v37  ;;  %556 = vmatpush1.msra.mxu0 %v504_v34 }
  0xe9   : > { %v503_v43 = vsel %vm501_vm1, %v322_v42, %v480_v40  ;;  %v502_v44 = vsel %vm501_vm1, %v321_v41, %v479_v39 }
  0xea   : > { %557 = vmatprep.subr.mxu0 %v503_v43 }
  0xeb   : > { %558 = vmatpush1.msra.mxu0 %v502_v44 }
  0xec   : > { %919 = vmatmul.mubr.msk.f32.vlgmr.msra.gmra.mxu0 %vm517_vm9, %v510_v45 }
  0xf2   : > { %v515_v46 = vpop.permute.xlu0 %514 }
 0x1ac   : > { %v593_v47 = vpop.f32.mrf.mxu0 }
 0x1ad   : > { %v594_v48 = vadd.f32 %v593_v47, %v515_v46 }
 0x1ae   : > { %v595_v49 = vpop.f32.mrf.mxu0 }
 0x1af   : > { %v1531_v50 = vmax.f32 %v594_v48, 0.0  ;;  %v596_v51 = vadd.f32 %v595_v49, %v515_v46 }
 0x1b1   : > { %656 = vrot.lane.b32.xlu0 %v1531_v50, %s1162_s29  ;;  %648 = vrot.lane.b32.xlu1 %v1531_v50, %s1163_s9  ;;  %v599_v52 = vmax.f32 %v596_v51, 0.0 }
 0x1b5   : > { %632 = vrot.lane.b32.xlu0 %v1531_v50, %s1164_s27  ;;  %650 = vrot.lane.b32.xlu1 %v599_v52, %s1163_s9 }
 0x1b9   : > { %640 = vrot.lane.b32.xlu0 %v1531_v50, %s1165_s14  ;;  %658 = vrot.lane.b32.xlu1 %v599_v52, %s1162_s29 }
 0x1bd   : > { %624 = vrot.lane.b32.xlu0 %v1531_v50, %s1166_s15  ;;  %634 = vrot.lane.b32.xlu1 %v599_v52, %s1164_s27  ;;  %s929_s27 = sshll.u32 %s1229_s25, 7  ;;  %s1172_s25 = smov [#allocation8]  }
 0x1be   : > { %s1093_s30 = sshll.u32 %s1172_s25, 4  ;;  %s1094_s30 = int_to_ptr.vmem [resolvable:$false] %s1093_s30 }
 0x1c1   : > { %608 = vrot.lane.b32.xlu0 %v1531_v50, %s1167_s16  ;;  %642 = vrot.lane.b32.xlu1 %v599_v52, %s1165_s14  ;;  %s292_s14 = scalar_lea.vmem [#allocation8], %s906_s18  ;;  %s1095_s18 = scalar_lea.vmem %s1094_s30, 256 }
 0x1c5   : > { %616 = vrot.lane.b32.xlu0 %v1531_v50, %s1170_s8  ;;  %626 = vrot.lane.b32.xlu1 %v599_v52, %s1166_s15  ;;  %s808_s15 = sshll.u32 %s292_s14, 4  ;;  %s809_s15 = int_to_ptr.vmem [resolvable:$true] %s808_s15 }
 0x1c6   : > { %s1089_s13 = scalar_lea.vmem %s809_s15, 128  ;;  %p1096_p4 = scmp.lt.s32.totalorder %s809_s15, %s1094_s30 }
 0x1c7   : > { %p1090_p13 = scmp.ne.s32.totalorder %s809_s15, %s1089_s13  ;;  %p1097_p6 = scmp.lt.s32.totalorder %s1095_s18, %s1089_s13 }
 0x1c9   : > { %600 = vrot.lane.b32.xlu0 %v1531_v50, %s1171_s10  ;;  %610 = vrot.lane.b32.xlu1 %v599_v52, %s1167_s16  ;;  %p1091_p1 = pnand %p1090_p13, %p1684_p0  ;;  %p1098_p8 = por %p1097_p6, %p1096_p4 }
 0x1cb   : > { %p1092_p2 = pneg %p1091_p1 }
 0x1cd   : > { %700 = vperm.xlu0 %1007, %v697_v53   ;;  %618 = vrot.lane.b32.xlu1 %v599_v52, %s1170_s8  ;;  %p1099_p12 = pnand %p1098_p8, %p1092_p2 }
 0x1d1   : > { %602 = vrot.lane.b32.xlu1 %v599_v52, %s1171_s10  ;;  %s806_s10 = scalar_lea.hbm %s1666_s6, %s929_s27 }
 0x223   : > { %v657_v56 = vpop.permute.xlu0 %656  ;;  %v649_v57 = vpop.permute.xlu1 %648 }
 0x227   : > { %v633_v58 = vpop.permute.xlu0 %632  ;;  %v651_v59 = vpop.permute.xlu1 %650 }
 0x228   : > { %v652_v3 = vsel %vm437_vm4, %v649_v57, %v651_v59  ;;  %v653_v7 = vsel %vm437_vm4, %v651_v59, %v649_v57 }
 0x229   : > { %v654_v16 = vmul.f32 %v652_v3, %v1431_v31 }
 0x22b   : > { %v641_v60 = vpop.permute.xlu0 %640  ;;  %v659_v61 = vpop.permute.xlu1 %658  ;;  %v684_v24 = vrot.slane %v654_v16, 4 }
 0x22c   : > { %v660_v62 = vsel %vm459_vm0, %v657_v56, %v659_v61  ;;  %v661_v63 = vsel %vm459_vm0, %v659_v61, %v657_v56 }
 0x22d   : > { %v662_v4 = vmul.f32 %v660_v62, %v1395_v14  ;;  %v663_v5 = vmul.f32 %v661_v63, %v1398_v15  ;;  %v655_v14 = vmul.f32 %v653_v7, %v1434_v32 }
 0x22f   : > { %920 = vmatprep.subr.msk.mxu1 %vm501_vm1, %v663_v5  ;;  %v635_v11 = vpop.permute.xlu1 %634  ;;  %v625_v18 = vpop.permute.xlu0 %624  ;;  %v685_v27 = vrot.slane %v655_v14, 4 }
 0x230   : > { %v636_v1 = vsel %vm393_vm2, %v633_v58, %v635_v11  ;;  %v637_v17 = vsel %vm393_vm2, %v635_v11, %v633_v58  ;;  %921 = vmatpush1.msk.msra.mxu1 %vm501_vm1, %v662_v4 }
 0x231   : > { %v639_v15 = vmul.f32 %v637_v17, %v1411_v23  ;;  %v638_v21 = vmul.f32 %v636_v1, %v1418_v26 }
 0x233   : > { %v643_v22 = vpop.permute.xlu1 %642  ;;  %v679_v28 = vrot.slane %v639_v15, 4  ;;  %v678_v32 = vrot.slane %v638_v21, 4  ;;  %v609_v30 = vpop.permute.xlu0 %608 }
 0x234   : > { %v644_v31 = vsel %vm415_vm3, %v641_v60, %v643_v22  ;;  %v645_v25 = vsel %vm415_vm3, %v643_v22, %v641_v60  ;;  %v696_v60 = vld [vmem:[#allocation7] sm:$0xf] }
 0x235   : > { %v646_v29 = vmul.f32 %v644_v31, %v1439_v35  ;;  %v647_v9 = vmul.f32 %v645_v25, %v1442_v36  ;;  %v693_v37 = vsel %vm501_vm1, %v599_v52, %v679_v28  ;;  %v692_v35 = vsel %vm501_vm1, %v1531_v50, %v678_v32 }
 0x237   : > { %v627_v33 = vpop.permute.xlu1 %626  ;;  %v695_v23 = vsel %vm501_vm1, %v647_v9, %v685_v27  ;;  %v694_v26 = vsel %vm501_vm1, %v646_v29, %v684_v24  ;;  %v617_v40 = vpop.permute.xlu0 %616 }
 0x238   : > { %736 = vmatprep.subr.mxu1 %v695_v23  ;;  %v628_v10 = vsel %vm371_vm5, %v625_v18, %v627_v33  ;;  %v629_v34 = vsel %vm371_vm5, %v627_v33, %v625_v18 }
 0x239   : > { %737 = vmatpush1.msra.mxu1 %v694_v26  ;;  %v630_v38 = vmul.f32 %v629_v34, %v1461_v54  ;;  %v631_v39 = vmul.f32 %v628_v10, %v1464_v55 }
 0x23a   : > { %738 = vmatprep.subr.mxu1 %v693_v37 }
 0x23b   : > { %739 = vmatpush1.msra.mxu1 %v692_v35  ;;  %v611_v36 = vpop.permute.xlu1 %610  ;;  %v672_v44 = vrot.slane %v630_v38, 4  ;;  %v673_v45 = vrot.slane %v631_v39, 4  ;;  %v601_v50 = vpop.permute.xlu0 %600 }
 0x23c   : > { %v612_v41 = vsel %vm327_vm6, %v609_v30, %v611_v36  ;;  %v613_v42 = vsel %vm327_vm6, %v611_v36, %v609_v30 }
 0x23d   : > { %v614_v54 = vmul.f32 %v613_v42, %v1484_v6  ;;  %v615_v55 = vmul.f32 %v612_v41, %v1492_v12 }
 0x23f   : > { %v619_v43 = vpop.permute.xlu1 %618  ;;  %v666_v6 = vrot.slane %v614_v54, 4  ;;  %v667_v58 = vrot.slane %v615_v55, 4 }
 0x240   : > { %v620_v46 = vsel %vm349_vm7, %v617_v40, %v619_v43  ;;  %v621_v47 = vsel %vm349_vm7, %v619_v43, %v617_v40 }
 0x241   : > { %v622_v48 = vmul.f32 %v621_v47, %v1496_v2  ;;  %v623_v49 = vmul.f32 %v620_v46, %v1499_v13 }
 0x243   : > { %v603_v51 = vpop.permute.xlu1 %602  ;;  %v691_v52 = vsel %vm501_vm1, %v623_v49, %v673_v45  ;;  %v690_v53 = vsel %vm501_vm1, %v622_v48, %v672_v44 }
 0x244   : > { %v604_v56 = vsel %vm306_vm8, %v601_v50, %v603_v51  ;;  %v605_v57 = vsel %vm306_vm8, %v603_v51, %v601_v50  ;;  %740 = vmatprep.subr.mxu1 %v691_v52 }
 0x245   : > { %v606_v12 = vmul.f32 %v605_v57, %v1507_v19  ;;  %v607_v2 = vmul.f32 %v604_v56, %v1510_v20  ;;  %741 = vmatpush1.msra.mxu1 %v690_v53  ;;  %v784_v19 = vcombine.high %v1340_v0, %v1340_v0 }
 0x247   : > { %v689_v13 = vsel %vm501_vm1, %v607_v2, %v667_v58  ;;  %v688_v59 = vsel %vm501_vm1, %v606_v12, %v666_v6 }
 0x248   : > { %742 = vmatprep.subr.mxu1 %v689_v13  ;;  %v701_v8 = vpop.permute.xlu0 %700 }
 0x249   : > { %743 = vmatpush1.msra.mxu1 %v688_v59 }
 0x24a   : > { %922 = vmatmul.mubr.msk.f32.vlgmr.msra.gmra.mxu1 %vm517_vm9, %v696_v60 }
 0x30a   : > { %v778_v61 = vpop.f32.mrf.mxu1 }
 0x30b   : > { %v779_v62 = vadd.f32 %v778_v61, %v701_v8 }
 0x30c   : > { %v780_v63 = vpop.f32.mrf.mxu1 }
 0x30d   : > { %v781_v20 = vadd.f32 %v780_v63, %v701_v8  ;;  %v786_v3 = vadd.f32 %v779_v62, %v1340_v0 }
 0x30f   : > { %v787_v4 = vadd.f32 %v784_v19, %v781_v20 }
 0x311   : > { %v790_v5 = vcombine.low %v786_v3, %v787_v4 }
 0x313   : > { %792 = vst [vmem:[%s292_s14] sm:$0xff] %v790_v5 }
 0x314   : > { %1102 = shalt.err (!%p1099_p12)
}
 0x315   : > { %s1103_s12 = scalar_lea.hbm %s806_s10, 128  ;;  %s1107_s1 = scalar_lea.hbm %s1666_s6, 256 }
 0x316   : > { %p1104_p3 = scmp.ne.s32.totalorder %s806_s10, %s1103_s12  ;;  %p1108_p5 = scmp.lt.s32.totalorder %s806_s10, %s1666_s6 }
 0x317   : > { %p1109_p9 = scmp.lt.s32.totalorder %s1107_s1, %s1103_s12 }
 0x318   : > { %p1105_p7 = pnand %p1104_p3, %p1684_p0 }
 0x319   : > { %p1110_p11 = por %p1109_p9, %p1108_p5 }
 0x31a   : > { %p1106_p10 = pneg %p1105_p7 }
 0x31c   : > { %p1111_p13 = pnand %p1110_p11, %p1106_p10 }
 0x31e   : > { %1114 = shalt.err (!%p1111_p13)
}
 0x31f   : > { %940 = dma.vmem_to_hbm [thread:$0]  (%p1684_p0), %s809_s15, 128, %s806_s10, %s794_s7  }
 0x320 PF: > { %s820_s27 = sand.u32 1, %s1145_s21   ;;  %p1685_p1 = scmp.ne.s32.totalorder %s1673_s28, 0 }
 0x321   : > { %p1686_p2 = scmp.ge.s32.totalorder %s1157_s24, 2  ;;  %s821_s14 = scalar_lea.sflag [#allocation4], %s820_s27 }
 0x323   : > { %p954_p4 = pnand %p1686_p2, %p1685_p1 }
 0x325   : > { %p955_p6 = pneg %p954_p4 }
 0x327   : > { %1140 = dma.done.wait (%p955_p6), %s821_s14, 128  }
 0x328   : > { %1142 = vsyncadd (%p955_p6), %s821_s14, 4294967168  ;;  %p20_p8 = scmp.ge.s32.totalorder %s1262_s11, 4   ;;  %s1687_s21 = smov %s1149_s22 }
 0x329   : > { %s1688_s22 = smov %s1153_s23  ;;  %s1689_s23 = smov %s1289_s20 }
 0x32a   : > { %s1690_s24 = smov %s1262_s11  ;;  %22 = sbr.rel (!%p20_p8) target bundleno = 8 (0x8), region = 104 }
 0x32f   :  { %826 = vsyncpa [#allocation3], 1 }
 0x330   :  { %828 = vsyncpa [#allocation3 + $0x1], 1 }
 0x331   :  { %829 = vsyncpa [#allocation6], 1 }
 0x332   :  { %830 = vsyncpa [#allocation4], 1 }
 0x333   :  { %832 = vsyncpa [#allocation4 + $0x1], 1 }

</bundles_post_ra>
